<compile_context>
chip_gen: v6e
topology: v6e:2x2x1
jax: 0.10.0
libtpu: 0.0.40
codegen_flags: <defaults>
</compile_context>

<pallas_src>
import functools

import jax
import jax.numpy as jnp
from jax import lax
from jax.experimental import pallas as pl
from jax.experimental.pallas import tpu as pltpu

LANES = 512     # lane-dense minor dim (multiple of 128)
TM = 2048       # max rows per DMA tile (multiple of 8)
NSPLIT = 2      # leading "parallel" grid axis (2 TensorCores on v7x)


def _round_up(x, m):
    return ((x + m - 1) // m) * m


def _dice_sums_kernel(x_ref, t_ref, inter_ref, ssum_ref, tsum_ref, *,
                      tm, chunk, rows, total_tiles, tiles_per_split):
    p = pl.program_id(0)   # parallel split
    k = pl.program_id(1)   # sequential accumulation axis

    # Per-split resident output block is the accumulator: zero at split start.
    @pl.when(k == 0)
    def _():
        inter_ref[...] = jnp.zeros_like(inter_ref)
        ssum_ref[...] = jnp.zeros_like(ssum_ref)
        tsum_ref[...] = jnp.zeros_like(tsum_ref)

    row_block = p * tiles_per_split + k          # logical (unclamped) tile id
    row_start = row_block * tm

    # Clamped-overhang tiles (only when total_tiles % NSPLIT != 0) contribute
    # nothing: skip all compute with a scalar gate instead of per-elem masks.
    @pl.when(row_block < total_tiles)
    def _():
        nchunks = tm // chunk

        def body(c, carry):
            inter_acc, s_acc, t_acc = carry
            r0 = pl.multiple_of(c * chunk, chunk)
            xv = x_ref[pl.ds(r0, chunk), :].astype(jnp.float32)
            tv = t_ref[pl.ds(r0, chunk), :].astype(jnp.float32)

            # Row-only validity mask (tiny (chunk, 1) iota) for the ragged
            # last tile.  Masking happens BEFORE any accumulation so garbage
            # rows (Pallas block overhang) never reach the sums.
            ridx = lax.broadcasted_iota(jnp.int32, (chunk, 1), 0)
            valid = (row_start + r0 + ridx) < rows

            # sigmoid(x) == 0.5 * (tanh(x/2) + 1): single EUP transcendental.
            sv = jnp.where(valid, 0.5 * (jnp.tanh(xv * 0.5) + 1.0), 0.0)
            tv = jnp.where(valid, tv, 0.0)

            def fold(v):
                # (chunk, LANES) -> (8, LANES); trailing tiles untouched, so
                # the reshape is a view and the sum is plain VPU adds.
                return jnp.sum(v.reshape(chunk // 8, 8, LANES), axis=0)

            return (inter_acc + fold(sv * tv),
                    s_acc + fold(sv),
                    t_acc + fold(tv))

        zero = jnp.zeros((8, LANES), jnp.float32)
        unroll = 2 if nchunks >= 2 else 1
        inter_acc, s_acc, t_acc = lax.fori_loop(
            0, nchunks, body, (zero, zero, zero), unroll=unroll)

        inter_ref[...] += inter_acc[None]
        ssum_ref[...] += s_acc[None]
        tsum_ref[...] += t_acc[None]


def dice_loss(inputs, targets, smooth=1.0):
    """Pallas TPU implementation of DiceLoss.forward."""
    x_flat = inputs.reshape(-1)
    t_flat = targets.reshape(-1)
    n = x_flat.shape[0]

    n_body = (n // LANES) * LANES   # lane-aligned body, handled by the kernel
    rows = n_body // LANES

    inter = jnp.float32(0.0)
    s_sum = jnp.float32(0.0)
    t_sum = jnp.float32(0.0)

    # Ragged tail (< LANES elements): fold with plain jnp in the wrapper —
    # negligible work, and it avoids padding/copying the full operands.
    if n_body < n:
        tx = x_flat[n_body:].astype(jnp.float32)
        tt = t_flat[n_body:].astype(jnp.float32)
        ts = jax.nn.sigmoid(tx)
        inter = inter + jnp.sum(ts * tt)
        s_sum = s_sum + jnp.sum(ts)
        t_sum = t_sum + jnp.sum(tt)

    if rows > 0:
        # Lane-dense 2-D view of the body (free reshape; no pad, no copy).
        x2d = x_flat[:n_body].reshape(rows, LANES)
        t2d = t_flat[:n_body].reshape(rows, LANES)

        tm = min(TM, _round_up(rows, 8))
        total_tiles = pl.cdiv(rows, tm)
        nsplit = min(NSPLIT, total_tiles)
        tiles_per_split = pl.cdiv(total_tiles, nsplit)
        chunk = 128 if tm % 128 == 0 else 8
        grid = (nsplit, tiles_per_split)

        def in_map(p, k):
            # Clamp so overhanging tiles re-read a valid block; their
            # contribution is skipped by the in-kernel pl.when gate.
            rb = p * tiles_per_split + k
            return (jnp.minimum(rb, total_tiles - 1), 0)

        part_shape = jax.ShapeDtypeStruct((nsplit, 8, LANES), jnp.float32)
        part_spec = pl.BlockSpec((1, 8, LANES), lambda p, k: (p, 0, 0))

        kernel = functools.partial(
            _dice_sums_kernel,
            tm=tm, chunk=chunk, rows=rows,
            total_tiles=total_tiles, tiles_per_split=tiles_per_split)

        inter_p, ssum_p, tsum_p = pl.pallas_call(
            kernel,
            out_shape=(part_shape, part_shape, part_shape),
            grid=grid,
            in_specs=[
                pl.BlockSpec((tm, LANES), in_map),
                pl.BlockSpec((tm, LANES), in_map),
            ],
            out_specs=(part_spec, part_spec, part_spec),
            compiler_params=pltpu.CompilerParams(
                dimension_semantics=("parallel", "arbitrary"),
                vmem_limit_bytes=48 * 1024 * 1024,
            ),
        )(x2d, t2d)

        inter = inter + jnp.sum(inter_p)
        s_sum = s_sum + jnp.sum(ssum_p)
        t_sum = t_sum + jnp.sum(tsum_p)

    dice = (2.0 * inter + smooth) / (s_sum + t_sum + smooth)
    return 1.0 - dice


def dice_loss_ref(inputs, targets, smooth=1.0):
    s = jax.nn.sigmoid(inputs.astype(jnp.float32)).reshape(-1)
    t = targets.astype(jnp.float32).reshape(-1)
    intersection = jnp.sum(s * t)
    dice = (2.0 * intersection + smooth) / (jnp.sum(s) + jnp.sum(t) + smooth)
    return 1.0 - dice


if __name__ == "__main__":
    key = jax.random.PRNGKey(0)

    def check(idx, shape, atol=1e-5, rtol=1e-5):
        k1, k2 = jax.random.split(jax.random.fold_in(key, idx))
        x = jax.random.normal(k1, shape, dtype=jnp.float32)
        t = (jax.random.uniform(k2, shape) > 0.5).astype(jnp.float32)
        out = dice_loss(x, t)
        jax.block_until_ready(out)
        ref = dice_loss_ref(x, t)
        assert jnp.allclose(out, ref, atol=atol, rtol=rtol), (shape, out, ref)

    # Primary small NCHW case from the module spec.
    check(0, (2, 4, 16, 16))
    # Tiny (< LANES elements): pure wrapper tail path.
    check(1, (1, 3, 7, 11))
    # Ragged: lane-aligned body with a partial row tile + wrapper tail.
    check(2, (3, 5, 37, 41))
    # Two full tiles: both parallel splits carry data.
    check(3, (8, 16, 128, 128), atol=1e-4, rtol=1e-4)
    # Three tiles: exercises the clamped-overhang pl.when gate on split 1.
    check(4, (12, 16, 128, 128), atol=1e-4, rtol=1e-4)

    print("KERNEL_OK")
</pallas_src>

<mosaic_0001>
module attributes {stable_mosaic.version = 11 : i64} {
  func.func @_dice_sums_kernel(%arg0: i32, %arg1: i32, %arg2: memref<8x512xf32, #tpu.memory_space<vmem>>, %arg3: memref<8x512xf32, #tpu.memory_space<vmem>>, %arg4: memref<1x8x512xf32, #tpu.memory_space<vmem>>, %arg5: memref<1x8x512xf32, #tpu.memory_space<vmem>>, %arg6: memref<1x8x512xf32, #tpu.memory_space<vmem>>) attributes {dimension_semantics = [#tpu.dimension_semantics<parallel>, #tpu.dimension_semantics<arbitrary>], iteration_bounds = array<i64: 1, 1>, scalar_prefetch = 0 : i64, scratch_operands = 0 : i64, tpu.core_type = #tpu.core_type<tc>, window_params = [{transform_indices = @transform_0, window_bounds = array<i64: 8, 512>}, {transform_indices = @transform_1, window_bounds = array<i64: 8, 512>}, {transform_indices = @transform_2, window_bounds = array<i64: 1, 8, 512>}, {transform_indices = @transform_3, window_bounds = array<i64: 1, 8, 512>}, {transform_indices = @transform_4, window_bounds = array<i64: 1, 8, 512>}]} {
    %c0_i32 = arith.constant 0 : i32
    %0 = arith.cmpi eq, %arg1, %c0_i32 : i32
    %1 = arith.extui %0 : i1 to i32
    %c0_i32_0 = arith.constant 0 : i32
    %2 = arith.cmpi ne, %1, %c0_i32_0 : i32
    scf.if %2 {
      %cst = arith.constant 0.000000e+00 : f32
      %9 = vector.broadcast %cst : f32 to vector<1x8x512xf32>
      %c0 = arith.constant 0 : index
      %c0_3 = arith.constant 0 : index
      %c0_4 = arith.constant 0 : index
      %10 = vector.load %arg4[%c0, %c0_3, %c0_4] : memref<1x8x512xf32, #tpu.memory_space<vmem>>, vector<1x8x512xf32>
      tpu.vector_store %arg4[%c0, %c0_3, %c0_4], %9 {strides = array<i32>} : memref<1x8x512xf32, #tpu.memory_space<vmem>>, vector<1x8x512xf32>,
      %cst_5 = arith.constant 0.000000e+00 : f32
      %11 = vector.broadcast %cst_5 : f32 to vector<1x8x512xf32>
      %c0_6 = arith.constant 0 : index
      %c0_7 = arith.constant 0 : index
      %c0_8 = arith.constant 0 : index
      %12 = vector.load %arg5[%c0_6, %c0_7, %c0_8] : memref<1x8x512xf32, #tpu.memory_space<vmem>>, vector<1x8x512xf32>
      tpu.vector_store %arg5[%c0_6, %c0_7, %c0_8], %11 {strides = array<i32>} : memref<1x8x512xf32, #tpu.memory_space<vmem>>, vector<1x8x512xf32>,
      %cst_9 = arith.constant 0.000000e+00 : f32
      %13 = vector.broadcast %cst_9 : f32 to vector<1x8x512xf32>
      %c0_10 = arith.constant 0 : index
      %c0_11 = arith.constant 0 : index
      %c0_12 = arith.constant 0 : index
      %14 = vector.load %arg6[%c0_10, %c0_11, %c0_12] : memref<1x8x512xf32, #tpu.memory_space<vmem>>, vector<1x8x512xf32>
      tpu.vector_store %arg6[%c0_10, %c0_11, %c0_12], %13 {strides = array<i32>} : memref<1x8x512xf32, #tpu.memory_space<vmem>>, vector<1x8x512xf32>,
    } else {
    }
    %c1_i32 = arith.constant 1 : i32
    %3 = arith.muli %arg0, %c1_i32 : i32
    %4 = arith.addi %3, %arg1 : i32
    %c8_i32 = arith.constant 8 : i32
    %5 = arith.muli %4, %c8_i32 : i32
    %c1_i32_1 = arith.constant 1 : i32
    %6 = arith.cmpi slt, %4, %c1_i32_1 : i32
    %7 = arith.extui %6 : i1 to i32
    %c0_i32_2 = arith.constant 0 : i32
    %8 = arith.cmpi ne, %7, %c0_i32_2 : i32
    scf.if %8 {
      %cst = arith.constant 0.000000e+00 : f32
      %9 = vector.broadcast %cst : f32 to vector<8x512xf32>
      %c0_i32_3 = arith.constant 0 : i32
      %c8_i32_4 = arith.constant 8 : i32
      %10 = arith.muli %c0_i32_3, %c8_i32_4 : i32
      %11 = tpu.assume_multiple %10, 8 : i32
      %12 = arith.index_cast %11 : i32 to index
      %c0 = arith.constant 0 : index
      %13 = vector.load %arg2[%12, %c0] : memref<8x512xf32, #tpu.memory_space<vmem>>, vector<8x512xf32>
      %14 = arith.index_cast %11 : i32 to index
      %c0_5 = arith.constant 0 : index
      %15 = vector.load %arg3[%14, %c0_5] : memref<8x512xf32, #tpu.memory_space<vmem>>, vector<8x512xf32>
      %16 = tpu.iota {dimensions = array<i32: 0>} : vector<8x1xi32>
      %17 = arith.addi %5, %11 : i32
      %18 = vector.broadcast %17 : i32 to vector<8x1xi32>
      %19 = arith.addi %18, %16 : vector<8x1xi32>
      %c4_i32 = arith.constant 4 : i32
      %20 = vector.broadcast %c4_i32 : i32 to vector<8x1xi32>
      %21 = arith.cmpi slt, %19, %20 : vector<8x1xi32>
      %cst_6 = arith.constant 5.000000e-01 : f32
      %22 = vector.broadcast %cst_6 : f32 to vector<8x512xf32>
      %23 = arith.mulf %13, %22 : vector<8x512xf32>
      %24 = math.tanh %23 : vector<8x512xf32>
      %cst_7 = arith.constant 1.000000e+00 : f32
      %25 = vector.broadcast %cst_7 : f32 to vector<8x512xf32>
      %26 = arith.addf %24, %25 : vector<8x512xf32>
      %cst_8 = arith.constant 5.000000e-01 : f32
      %27 = vector.broadcast %cst_8 : f32 to vector<8x512xf32>
      %28 = arith.mulf %27, %26 : vector<8x512xf32>
      %cst_9 = arith.constant 0.000000e+00 : f32
      %29 = vector.shape_cast %21 : vector<8x1xi1> to vector<8x1xi1>
      %30 = vector.broadcast %29 : vector<8x1xi1> to vector<8x512xi1>
      %31 = vector.broadcast %cst_9 : f32 to vector<8x512xf32>
      %32 = arith.select %30, %28, %31 : vector<8x512xi1>, vector<8x512xf32>
      %cst_10 = arith.constant 0.000000e+00 : f32
      %33 = vector.shape_cast %21 : vector<8x1xi1> to vector<8x1xi1>
      %34 = vector.broadcast %33 : vector<8x1xi1> to vector<8x512xi1>
      %35 = vector.broadcast %cst_10 : f32 to vector<8x512xf32>
      %36 = arith.select %34, %15, %35 : vector<8x512xi1>, vector<8x512xf32>
      %37 = arith.mulf %32, %36 : vector<8x512xf32>
      %38 = vector.shape_cast %37 : vector<8x512xf32> to vector<1x8x512xf32>
      %cst_11 = arith.constant dense<0.000000e+00> : vector<8x512xf32>
      %39 = vector.multi_reduction <add>, %38, %cst_11 [0] : vector<1x8x512xf32> to vector<8x512xf32>
      %40 = arith.addf %9, %39 : vector<8x512xf32>
      %41 = vector.shape_cast %32 : vector<8x512xf32> to vector<1x8x512xf32>
      %cst_12 = arith.constant dense<0.000000e+00> : vector<8x512xf32>
      %42 = vector.multi_reduction <add>, %41, %cst_12 [0] : vector<1x8x512xf32> to vector<8x512xf32>
      %43 = arith.addf %9, %42 : vector<8x512xf32>
      %44 = vector.shape_cast %36 : vector<8x512xf32> to vector<1x8x512xf32>
      %cst_13 = arith.constant dense<0.000000e+00> : vector<8x512xf32>
      %45 = vector.multi_reduction <add>, %44, %cst_13 [0] : vector<1x8x512xf32> to vector<8x512xf32>
      %46 = arith.addf %9, %45 : vector<8x512xf32>
      %c1_i32_14 = arith.constant 1 : i32
      %c0_15 = arith.constant 0 : index
      %c0_16 = arith.constant 0 : index
      %c0_17 = arith.constant 0 : index
      %47 = vector.load %arg4[%c0_15, %c0_16, %c0_17] : memref<1x8x512xf32, #tpu.memory_space<vmem>>, vector<1x8x512xf32>
      %48 = vector.shape_cast %40 : vector<8x512xf32> to vector<1x8x512xf32>
      %49 = arith.addf %47, %48 : vector<1x8x512xf32>
      %c0_18 = arith.constant 0 : index
      %c0_19 = arith.constant 0 : index
      %c0_20 = arith.constant 0 : index
      %50 = vector.load %arg4[%c0_18, %c0_19, %c0_20] : memref<1x8x512xf32, #tpu.memory_space<vmem>>, vector<1x8x512xf32>
      tpu.vector_store %arg4[%c0_18, %c0_19, %c0_20], %49 {strides = array<i32>} : memref<1x8x512xf32, #tpu.memory_space<vmem>>, vector<1x8x512xf32>,
      %c0_21 = arith.constant 0 : index
      %c0_22 = arith.constant 0 : index
      %c0_23 = arith.constant 0 : index
      %51 = vector.load %arg5[%c0_21, %c0_22, %c0_23] : memref<1x8x512xf32, #tpu.memory_space<vmem>>, vector<1x8x512xf32>
      %52 = vector.shape_cast %43 : vector<8x512xf32> to vector<1x8x512xf32>
      %53 = arith.addf %51, %52 : vector<1x8x512xf32>
      %c0_24 = arith.constant 0 : index
      %c0_25 = arith.constant 0 : index
      %c0_26 = arith.constant 0 : index
      %54 = vector.load %arg5[%c0_24, %c0_25, %c0_26] : memref<1x8x512xf32, #tpu.memory_space<vmem>>, vector<1x8x512xf32>
      tpu.vector_store %arg5[%c0_24, %c0_25, %c0_26], %53 {strides = array<i32>} : memref<1x8x512xf32, #tpu.memory_space<vmem>>, vector<1x8x512xf32>,
      %c0_27 = arith.constant 0 : index
      %c0_28 = arith.constant 0 : index
      %c0_29 = arith.constant 0 : index
      %55 = vector.load %arg6[%c0_27, %c0_28, %c0_29] : memref<1x8x512xf32, #tpu.memory_space<vmem>>, vector<1x8x512xf32>
      %56 = vector.shape_cast %46 : vector<8x512xf32> to vector<1x8x512xf32>
      %57 = arith.addf %55, %56 : vector<1x8x512xf32>
      %c0_30 = arith.constant 0 : index
      %c0_31 = arith.constant 0 : index
      %c0_32 = arith.constant 0 : index
      %58 = vector.load %arg6[%c0_30, %c0_31, %c0_32] : memref<1x8x512xf32, #tpu.memory_space<vmem>>, vector<1x8x512xf32>
      tpu.vector_store %arg6[%c0_30, %c0_31, %c0_32], %57 {strides = array<i32>} : memref<1x8x512xf32, #tpu.memory_space<vmem>>, vector<1x8x512xf32>,
    } else {
    }
    return
  }
  func.func @transform_0(%arg0: i32, %arg1: i32) -> (i32, i32) {
    %c1_i32 = arith.constant 1 : i32
    %0 = arith.muli %arg0, %c1_i32 : i32
    %1 = arith.addi %0, %arg1 : i32
    %c0_i32 = arith.constant 0 : i32
    %2 = arith.minsi %1, %c0_i32 : i32
    %c0_i32_0 = arith.constant 0 : i32
    %c0_i32_1 = arith.constant 0 : i32
    return %2, %c0_i32_0 : i32, i32
  }
  func.func @transform_1(%arg0: i32, %arg1: i32) -> (i32, i32) {
    %c1_i32 = arith.constant 1 : i32
    %0 = arith.muli %arg0, %c1_i32 : i32
    %1 = arith.addi %0, %arg1 : i32
    %c0_i32 = arith.constant 0 : i32
    %2 = arith.minsi %1, %c0_i32 : i32
    %c0_i32_0 = arith.constant 0 : i32
    %c0_i32_1 = arith.constant 0 : i32
    return %2, %c0_i32_0 : i32, i32
  }
  func.func @transform_2(%arg0: i32, %arg1: i32) -> (i32, i32, i32) {
    %c0_i32 = arith.constant 0 : i32
    %c0_i32_0 = arith.constant 0 : i32
    %c0_i32_1 = arith.constant 0 : i32
    return %arg0, %c0_i32, %c0_i32_0 : i32, i32, i32
  }
  func.func @transform_3(%arg0: i32, %arg1: i32) -> (i32, i32, i32) {
    %c0_i32 = arith.constant 0 : i32
    %c0_i32_0 = arith.constant 0 : i32
    %c0_i32_1 = arith.constant 0 : i32
    return %arg0, %c0_i32, %c0_i32_0 : i32, i32, i32
  }
  func.func @transform_4(%arg0: i32, %arg1: i32) -> (i32, i32, i32) {
    %c0_i32 = arith.constant 0 : i32
    %c0_i32_0 = arith.constant 0 : i32
    %c0_i32_1 = arith.constant 0 : i32
    return %arg0, %c0_i32, %c0_i32_0 : i32, i32, i32
  }
}

</mosaic_0001>

<bundles_post_ra>
// kernel: tpu_custom_call.1
= control target key start
LH: loop header
LB: loop body
LE: loop exit
PB: predicated region body
PF: predicated region fallthrough
CT: control target
= control target key end

     0   :  { %10 = vsyncpa [#allocation3], 0  ;;  %s469_s0 = inlined_call_operand.hbm [shape: f32[4,512], index: 0, kind: input, shape index: {}]   ;;  %s470_s1 = inlined_call_operand.hbm [shape: f32[4,512], index: 1, kind: input, shape index: {}]   ;;  %s471_s2 = inlined_call_operand.hbm [shape: f32[1,8,512], index: 2, kind: output, shape index: {0}]   ;;  %s472_s3 = inlined_call_operand.hbm [shape: f32[1,8,512], index: 3, kind: output, shape index: {1}]   ;;  %s473_s4 = inlined_call_operand.hbm [shape: f32[1,8,512], index: 4, kind: output, shape index: {2}]  }
   0x1   :  { %11 = vsyncpa [#allocation6], 0 }
   0x2   :  { %12 = vsyncpa [#allocation4], 0 }
   0x3   :  { %13 = vsyncpa [#allocation9], 0 }
   0x4   :  { %25 = vsyncadd [#allocation3], 256  ;;  %s414_s15 = smov [#allocation2]  }
   0x5   :  { %s31_s16 = sshll.u32 %s414_s15, 4  ;;  %s32_s16 = int_to_ptr.vmem [resolvable:$true] %s31_s16 }
   0x6   :  { %s314_s17 = scalar_lea.vmem %s32_s16, 256  ;;  %s318_s18 = scalar_lea.vmem %s32_s16, 512 }
   0x7   :  { %p315_p0 = scmp.ne.s32.totalorder %s32_s16, %s314_s17  ;;  %p319_p1 = scmp.lt.s32.totalorder %s32_s16, %s32_s16 }
   0x8   :  { %p320_p2 = scmp.lt.s32.totalorder %s318_s18, %s314_s17 }
   0xa   :  { %p321_p3 = por %p320_p2, %p319_p1 }
   0xc   :  { %p322_p4 = pnand %p321_p3, %p315_p0 }
   0xe   :  { %325 = shalt.err (!%p322_p4)
}
   0xf   :  { %s415_s19 = smov 256   ;;  %s416_s20 = smov 16  }
  0x10   :  { %37 = dma.hbm_to_vmem [thread:$0]  %s469_s0, 256, %s32_s16, [#allocation3], %s415_s19, %s415_s19, %s416_s20  }
  0x11   :  { %49 = vsyncadd [#allocation6], 256  ;;  %s417_s23 = smov [#allocation5]  }
  0x12   :  { %s55_s24 = sshll.u32 %s417_s23, 4  ;;  %s56_s24 = int_to_ptr.vmem [resolvable:$true] %s55_s24 }
  0x13   :  { %s334_s25 = scalar_lea.vmem %s56_s24, 256  ;;  %s338_s26 = scalar_lea.vmem %s56_s24, 512 }
  0x14   :  { %p335_p5 = scmp.ne.s32.totalorder %s56_s24, %s334_s25  ;;  %p339_p6 = scmp.lt.s32.totalorder %s56_s24, %s56_s24 }
  0x15   :  { %p340_p7 = scmp.lt.s32.totalorder %s338_s26, %s334_s25 }
  0x17   :  { %p341_p8 = por %p340_p7, %p339_p6 }
  0x19   :  { %p342_p9 = pnand %p341_p8, %p335_p5 }
  0x1b   :  { %345 = shalt.err (!%p342_p9)
}
  0x1c   :  { %61 = dma.hbm_to_vmem [thread:$0]  %s470_s1, 256, %s56_s24, [#allocation6], %s415_s19, %s415_s19, %s416_s20  }
  0x1d   :  { %406 = dma.done.wait [#allocation3], 512  }
  0x1e   :  { %407 = vsyncadd [#allocation3], 4294966784 }
  0x1f   :  { %408 = dma.done.wait [#allocation6], 512  }
  0x20   :  { %409 = vsyncadd [#allocation6], 4294966784  ;;  %v117_v0 = vlaneseq  ;;  %v107_v2 = vld [vmem:[#allocation2] sm:$0xff]  ;;  %v109_v3 = vld [vmem:[#allocation2 + $0x10] sm:$0xff]  ;;  %s418_s0 = smov [#allocation8]   ;;  %s419_s29 = smov [#allocation10]  }
  0x21   :  { %v108_v4 = vld [vmem:[#allocation2 + $0x8] sm:$0xff]  ;;  %v123_v5 = vmul.f32 0.5, %v107_v2  ;;  %v125_v6 = vmul.f32 0.5, %v109_v3  ;;  %v110_v7 = vld [vmem:[#allocation2 + $0x18] sm:$0xff]  ;;  %v292_v10 = vld [vmem:[#allocation5] ss:$16 sps:$4 sm:$0xff]  }
  0x22   :  { %v118_v1 = vshrl.u32 %v117_v0, 7  ;;  %v124_v8 = vmul.f32 0.5, %v108_v4  ;;  %v126_v9 = vmul.f32 0.5, %v110_v7  ;;  %v294_v11 = vld [vmem:[#allocation5 + $0x4] ss:$16 sps:$4 sm:$0xff]   ;;  %s253_s1 = sshll.u32 %s418_s0, 4  ;;  %s254_s1 = int_to_ptr.vmem [resolvable:$true] %s253_s1 }
  0x23   :  { %298 = vtanh.f32 %v123_v5  ;;  %v295_v12 = vld [vmem:[#allocation5 + $0x8] ss:$16 sps:$4 sm:$0xff]   ;;  %v297_v13 = vld [vmem:[#allocation5 + $0xc] ss:$16 sps:$4 sm:$0xff]   ;;  %s263_s30 = sshll.u32 %s419_s29, 4  ;;  %s420_s5 = smov [#allocation7]   ;;  %s264_s30 = int_to_ptr.vmem [resolvable:$true] %s263_s30 }
  0x24   :  { %vm122_vm0 = vcmp.lt.s32.totalorder %v118_v1, 4  ;;  %300 = vtanh.f32 %v125_v6  ;;  %s243_s6 = sshll.u32 %s420_s5, 4  ;;  %s346_s7 = scalar_lea.vmem %s254_s1, 512  ;;  %s244_s6 = int_to_ptr.vmem [resolvable:$true] %s243_s6 }
  0x25   :  { %v169_v14 = vsel %vm122_vm0, %v292_v10, 0.0  ;;  %v170_v15 = vsel %vm122_vm0, %v294_v11, 0.0  ;;  %302 = vtanh.f32 %v124_v8  ;;  %v171_v16 = vsel %vm122_vm0, %v295_v12, 0.0  ;;  %p347_p10 = scmp.ne.s32.totalorder %s254_s1, %s346_s7  ;;  %p351_p11 = scmp.lt.s32.totalorder %s254_s1, %s254_s1 }
  0x26   :  { %v172_v17 = vsel %vm122_vm0, %v297_v13, 0.0  ;;  %304 = vtanh.f32 %v126_v9  ;;  %233 = vst [vmem:[#allocation10] sm:$0xff] %v169_v14  ;;  %234 = vst [vmem:[#allocation10 + $0x8] sm:$0xff] %v170_v15  ;;  %p352_p12 = scmp.lt.s32.totalorder %s346_s7, %s346_s7 }
  0x27   :  { %235 = vst [vmem:[#allocation10 + $0x10] sm:$0xff] %v171_v16  ;;  %236 = vst [vmem:[#allocation10 + $0x18] sm:$0xff] %v172_v17 }
  0x28   :  { %p353_p13 = por %p352_p12, %p351_p11 }
  0x2a   :  { %p354_p0 = pnand %p353_p13, %p347_p10 }
  0x30   :  { %v299_v18 = vpop.eup %298 }
  0x31   :  { %v301_v19 = vpop.eup %300  ;;  %v131_v20 = vadd.f32 1.0, %v299_v18 }
  0x32   :  { %v303_v21 = vpop.eup %302  ;;  %v133_v22 = vadd.f32 1.0, %v301_v19 }
  0x33   :  { %v305_v23 = vpop.eup %304  ;;  %v135_v24 = vmul.f32 0.5, %v131_v20  ;;  %v132_v25 = vadd.f32 1.0, %v303_v21 }
  0x34   :  { %v137_v26 = vmul.f32 0.5, %v133_v22  ;;  %v134_v27 = vadd.f32 1.0, %v305_v23 }
  0x35   :  { %v136_v28 = vmul.f32 0.5, %v132_v25 }
  0x36   :  { %v145_v29 = vcombine.low %v135_v24, %v137_v26  ;;  %v146_v30 = vcombine.high %v135_v24, %v137_v26  ;;  %v138_v31 = vmul.f32 0.5, %v134_v27 }
  0x38   :  { %v153_v32 = vsel %vm122_vm0, %v145_v29, 0.0  ;;  %v154_v33 = vsel %vm122_vm0, %v146_v30, 0.0  ;;  %v147_v34 = vcombine.low %v136_v28, %v138_v31  ;;  %v148_v35 = vcombine.high %v136_v28, %v138_v31 }
  0x39   :  { %v173_v36 = vmul.f32 %v169_v14, %v153_v32  ;;  %v174_v37 = vmul.f32 %v170_v15, %v154_v33  ;;  %221 = vst [vmem:[#allocation8] sm:$0xff] %v153_v32  ;;  %222 = vst [vmem:[#allocation8 + $0x8] sm:$0xff] %v154_v33 }
  0x3a   :  { %v155_v38 = vsel %vm122_vm0, %v147_v34, 0.0  ;;  %v156_v39 = vsel %vm122_vm0, %v148_v35, 0.0 }
  0x3b   :  { %v175_v40 = vmul.f32 %v171_v16, %v155_v38  ;;  %v176_v41 = vmul.f32 %v172_v17, %v156_v39  ;;  %223 = vst [vmem:[#allocation8 + $0x10] sm:$0xff] %v155_v38  ;;  %224 = vst [vmem:[#allocation8 + $0x18] sm:$0xff] %v156_v39 }
  0x3c   :  { %209 = vst [vmem:[#allocation7] sm:$0xff] %v173_v36  ;;  %210 = vst [vmem:[#allocation7 + $0x8] sm:$0xff] %v174_v37 }
  0x3d   :  { %357 = shalt.err (!%p354_p0)
}
  0x3e   :  { %256 = dma.vmem_to_hbm [thread:$0]  %s254_s1, 512, %s472_s3, [#allocation9]  }
  0x3f   :  { %s366_s10 = scalar_lea.vmem %s264_s30, 512  ;;  %p371_p2 = scmp.lt.s32.totalorder %s264_s30, %s264_s30 }
  0x40   :  { %p367_p1 = scmp.ne.s32.totalorder %s264_s30, %s366_s10  ;;  %p372_p3 = scmp.lt.s32.totalorder %s366_s10, %s366_s10 }
  0x42   :  { %p373_p4 = por %p372_p3, %p371_p2 }
  0x44   :  { %p374_p5 = pnand %p373_p4, %p367_p1 }
  0x46   :  { %377 = shalt.err (!%p374_p5)
}
  0x47   :  { %266 = dma.vmem_to_hbm [thread:$0]  %s264_s30, 512, %s473_s4, [#allocation9]   ;;  %211 = vst [vmem:[#allocation7 + $0x10] sm:$0xff] %v175_v40  ;;  %212 = vst [vmem:[#allocation7 + $0x18] sm:$0xff] %v176_v41 }
  0x48   :  { %s386_s13 = scalar_lea.vmem %s244_s6, 512  ;;  %p391_p7 = scmp.lt.s32.totalorder %s244_s6, %s244_s6 }
  0x49   :  { %p387_p6 = scmp.ne.s32.totalorder %s244_s6, %s386_s13  ;;  %p392_p8 = scmp.lt.s32.totalorder %s386_s13, %s386_s13 }
  0x4b   :  { %p393_p9 = por %p392_p8, %p391_p7 }
  0x4d   :  { %p394_p10 = pnand %p393_p9, %p387_p6 }
  0x4f   :  { %397 = shalt.err (!%p394_p10)
}
  0x50   :  { %246 = dma.vmem_to_hbm [thread:$0]  %s244_s6, 512, %s471_s2, [#allocation4]  }
  0x51   :  { %410 = dma.done.wait [#allocation4], 512  }
  0x52   :  { %411 = vsyncadd [#allocation4], 4294966784 }
  0x53   :  { %412 = dma.done.wait [#allocation9], 1024  }
  0x54   :  { %413 = vsyncadd [#allocation9], 4294966272 }
  0x55   :  { %276 = vsyncpa [#allocation3], 1 }
  0x56   :  { %277 = vsyncpa [#allocation6], 1 }
  0x57   :  { %278 = vsyncpa [#allocation4], 1 }
  0x58   :  { %279 = vsyncpa [#allocation9], 1 }

</bundles_post_ra>
